<compile_context>
chip_gen: v7x
topology: tpu7x:2x2x1
jax: 0.10.0
libtpu: 0.0.40
codegen_flags: <defaults>
</compile_context>

<pallas_src>
import functools

import jax
import jax.numpy as jnp
from jax.experimental import pallas as pl
from jax.experimental.pallas import tpu as pltpu

LANE = 128      # lane width (last dim)
TM_MAX = 2048   # rows per grid step: (2048, 128) f32 = 1 MiB/block per input
                # -> 4 MiB double-buffered total, safe on v5e/v6e/v7x defaults
NUM_SLICES = 2  # leading "parallel" grid axis (megacore split on v7x)


def _bce_weight_kernel(x_ref, y_ref, out_ref, *, alpha):
    # out_ref is the (8, LANE) resident accumulator for this slice
    # (its index_map ignores the reduction axis).
    @pl.when(pl.program_id(1) == 0)
    def _():
        out_ref[...] = jnp.zeros_like(out_ref)

    x = x_ref[...].astype(jnp.float32)
    y = y_ref[...].astype(jnp.float32)

    # Numerically stable reformulation of
    #   -(1-a)(1-y)*log(1-sigmoid(x)) - a*y*log(sigmoid(x))
    # using log(sigmoid(x)) = -softplus(-x), log(1-sigmoid(x)) = -softplus(x):
    #   loss = softplus(x) * ((1-a)*(1-y) + a*y) - a*y*x
    # softplus(x) = max(x, 0) + log1p(exp(-|x|))  (one exp + one log per element)
    sp = jnp.maximum(x, 0.0) + jnp.log1p(jnp.exp(-jnp.abs(x)))
    # (1-a)*(1-y) + a*y  ==  (1-a) + (2a-1)*y   (one mul + one add on the VPU)
    w = (1.0 - alpha) + (2.0 * alpha - 1.0) * y
    loss = sp * w - alpha * (y * x)

    # Fold the TM rows into the resident (8, LANE) accumulator. The leading-axis
    # sum over contiguous sublane groups of 8 lowers to plain VPU adds; no
    # cross-lane XLU work or scalar handoff on the per-step critical path.
    out_ref[...] += loss.reshape(-1, 8, LANE).sum(axis=0)


def bce_loss_with_weight(x, label, alpha=0.99):
    """Pallas TPU implementation of the weighted BCE loss (scalar mean)."""
    assert x.shape == label.shape
    total = x.size

    xf = jnp.ravel(x)
    yf = jnp.ravel(label)

    # Row geometry: pad the row count up to a multiple of 8 (sublane), pick the
    # row tile, then pad up to a whole number of (slices * tile) rows so every
    # grid step sees a full block. Padding uses x = -1e4, y = 0, for which
    # softplus(-1e4) == 0 exactly in f32 -> zero contribution to the sum.
    m_raw = -(-total // LANE)
    m8 = -(-m_raw // 8) * 8
    tm = min(TM_MAX, m8)
    slices = NUM_SLICES if m8 >= NUM_SLICES * tm else 1
    m_pad = -(-m8 // (slices * tm)) * (slices * tm)
    steps = m_pad // (slices * tm)

    pad = m_pad * LANE - total
    if pad:
        xf = jnp.pad(xf, (0, pad), constant_values=-1e4)
        yf = jnp.pad(yf, (0, pad), constant_values=0)

    # Note: inputs are read at their native dtype (bf16 inputs halve HBM traffic);
    # all math is done in f32 inside the kernel.
    x2 = xf.reshape(m_pad, LANE)
    y2 = yf.reshape(m_pad, LANE)

    kernel = functools.partial(_bce_weight_kernel, alpha=float(alpha))

    partials = pl.pallas_call(
        kernel,
        out_shape=jax.ShapeDtypeStruct((slices * 8, LANE), jnp.float32),
        grid_spec=pltpu.PrefetchScalarGridSpec(
            num_scalar_prefetch=0,
            grid=(slices, steps),
            in_specs=[
                pl.BlockSpec((tm, LANE), lambda c, i: (c * steps + i, 0)),
                pl.BlockSpec((tm, LANE), lambda c, i: (c * steps + i, 0)),
            ],
            # Lane-dense (8, 128) accumulator block per slice, resident across
            # the reduction axis (index_map ignores i).
            out_specs=pl.BlockSpec((8, LANE), lambda c, i: (c, 0)),
        ),
        compiler_params=pltpu.CompilerParams(
            # slice axis parallel (both TCs on v7x), reduction axis arbitrary
            dimension_semantics=("parallel", "arbitrary"),
            # headroom for the double-buffered 1 MiB input blocks on all chips
            vmem_limit_bytes=32 << 20,
        ),
    )(x2, y2)

    # Single cross-lane reduce + mean, done once in XLA over a tiny array.
    return jnp.sum(partials) / jnp.float32(total)


if __name__ == "__main__":
    key = jax.random.PRNGKey(0)
    kx, kl = jax.random.split(key)

    # Shapes consistent with a DQN-style NCHW prediction map.
    x = jax.random.normal(kx, (2, 4, 16, 16), dtype=jnp.float32)
    label = jax.random.bernoulli(kl, 0.3, (2, 4, 16, 16)).astype(jnp.float32)

    loss = bce_loss_with_weight(x, label, alpha=0.99)
    jax.block_until_ready(loss)

    # sanity check against a pure-JAX reference (same math as the PyTorch module)
    s = jax.nn.sigmoid(x)
    ref = jnp.mean(-(1 - 0.99) * (1 - label) * jnp.log(1 - s)
                   - 0.99 * label * jnp.log(s))
    assert jnp.allclose(loss, ref, rtol=1e-5, atol=1e-6), (loss, ref)

    print("KERNEL_OK")
</pallas_src>

<mosaic_0001>
module attributes {stable_mosaic.version = 11 : i64} {
  func.func @_bce_weight_kernel(%arg0: i32, %arg1: i32, %arg2: memref<16x128xf32, #tpu.memory_space<vmem>>, %arg3: memref<16x128xf32, #tpu.memory_space<vmem>>, %arg4: memref<8x128xf32, #tpu.memory_space<vmem>>) attributes {dimension_semantics = [#tpu.dimension_semantics<parallel>, #tpu.dimension_semantics<arbitrary>], iteration_bounds = array<i64: 1, 1>, scalar_prefetch = 0 : i64, scratch_operands = 0 : i64, tpu.core_type = #tpu.core_type<tc>, window_params = [{transform_indices = @transform_0, window_bounds = array<i64: 16, 128>}, {transform_indices = @transform_1, window_bounds = array<i64: 16, 128>}, {transform_indices = @transform_2, window_bounds = array<i64: 8, 128>}]} {
    %c0_i32 = arith.constant 0 : i32
    %0 = arith.cmpi eq, %arg1, %c0_i32 : i32
    %1 = arith.extui %0 : i1 to i32
    %c0_i32_0 = arith.constant 0 : i32
    %2 = arith.cmpi ne, %1, %c0_i32_0 : i32
    scf.if %2 {
      %cst_13 = arith.constant 0.000000e+00 : f32
      %27 = vector.broadcast %cst_13 : f32 to vector<8x128xf32>
      %c0_14 = arith.constant 0 : index
      %c0_15 = arith.constant 0 : index
      %28 = vector.load %arg4[%c0_14, %c0_15] : memref<8x128xf32, #tpu.memory_space<vmem>>, vector<8x128xf32>
      tpu.vector_store %arg4[%c0_14, %c0_15], %27 {strides = array<i32>} : memref<8x128xf32, #tpu.memory_space<vmem>>, vector<8x128xf32>,
    } else {
    }
    %c0 = arith.constant 0 : index
    %c0_1 = arith.constant 0 : index
    %3 = vector.load %arg2[%c0, %c0_1] : memref<16x128xf32, #tpu.memory_space<vmem>>, vector<16x128xf32>
    %c0_2 = arith.constant 0 : index
    %c0_3 = arith.constant 0 : index
    %4 = vector.load %arg3[%c0_2, %c0_3] : memref<16x128xf32, #tpu.memory_space<vmem>>, vector<16x128xf32>
    %cst = arith.constant 0.000000e+00 : f32
    %5 = vector.broadcast %cst : f32 to vector<16x128xf32>
    %6 = arith.maximumf %3, %5 : vector<16x128xf32>
    %7 = math.absf %3 : vector<16x128xf32>
    %cst_4 = arith.constant 0.000000e+00 : f32
    %8 = vector.broadcast %cst_4 : f32 to vector<16x128xf32>
    %9 = arith.subf %8, %7 : vector<16x128xf32>
    %10 = math.exp %9 : vector<16x128xf32>
    %11 = math.log1p %10 : vector<16x128xf32>
    %12 = arith.addf %6, %11 : vector<16x128xf32>
    %cst_5 = arith.constant 9.800000e-01 : f32
    %13 = vector.broadcast %cst_5 : f32 to vector<16x128xf32>
    %14 = arith.mulf %13, %4 : vector<16x128xf32>
    %cst_6 = arith.constant 0.00999999977 : f32
    %15 = vector.broadcast %cst_6 : f32 to vector<16x128xf32>
    %16 = arith.addf %15, %14 : vector<16x128xf32>
    %17 = arith.mulf %12, %16 : vector<16x128xf32>
    %18 = arith.mulf %4, %3 : vector<16x128xf32>
    %cst_7 = arith.constant 9.900000e-01 : f32
    %19 = vector.broadcast %cst_7 : f32 to vector<16x128xf32>
    %20 = arith.mulf %19, %18 : vector<16x128xf32>
    %21 = arith.subf %17, %20 : vector<16x128xf32>
    %c0_8 = arith.constant 0 : index
    %c0_9 = arith.constant 0 : index
    %22 = vector.load %arg4[%c0_8, %c0_9] : memref<8x128xf32, #tpu.memory_space<vmem>>, vector<8x128xf32>
    %23 = vector.shape_cast %21 : vector<16x128xf32> to vector<2x8x128xf32>
    %cst_10 = arith.constant dense<0.000000e+00> : vector<8x128xf32>
    %24 = vector.multi_reduction <add>, %23, %cst_10 [0] : vector<2x8x128xf32> to vector<8x128xf32>
    %25 = arith.addf %22, %24 : vector<8x128xf32>
    %c0_11 = arith.constant 0 : index
    %c0_12 = arith.constant 0 : index
    %26 = vector.load %arg4[%c0_11, %c0_12] : memref<8x128xf32, #tpu.memory_space<vmem>>, vector<8x128xf32>
    tpu.vector_store %arg4[%c0_11, %c0_12], %25 {strides = array<i32>} : memref<8x128xf32, #tpu.memory_space<vmem>>, vector<8x128xf32>,
    return
  }
  func.func @transform_0(%arg0: i32, %arg1: i32) -> (i32, i32) {
    %c1_i32 = arith.constant 1 : i32
    %0 = arith.muli %arg0, %c1_i32 : i32
    %1 = arith.addi %0, %arg1 : i32
    %c0_i32 = arith.constant 0 : i32
    %c0_i32_0 = arith.constant 0 : i32
    return %1, %c0_i32 : i32, i32
  }
  func.func @transform_1(%arg0: i32, %arg1: i32) -> (i32, i32) {
    %c1_i32 = arith.constant 1 : i32
    %0 = arith.muli %arg0, %c1_i32 : i32
    %1 = arith.addi %0, %arg1 : i32
    %c0_i32 = arith.constant 0 : i32
    %c0_i32_0 = arith.constant 0 : i32
    return %1, %c0_i32 : i32, i32
  }
  func.func @transform_2(%arg0: i32, %arg1: i32) -> (i32, i32) {
    %c0_i32 = arith.constant 0 : i32
    %c0_i32_0 = arith.constant 0 : i32
    return %arg0, %c0_i32 : i32, i32
  }
}

</mosaic_0001>

<bundles_post_ra>
// kernel: tpu_custom_call.1
= control target key start
LH: loop header
LB: loop body
LE: loop exit
PB: predicated region body
PF: predicated region fallthrough
CT: control target
= control target key end

     0   :  { %7 = vsyncpa [#allocation3], 0  ;;  %s265_s0 = inlined_call_operand.hbm [shape: f32[16,128], index: 0, kind: input, shape index: {}]   ;;  %s266_s1 = inlined_call_operand.hbm [shape: f32[16,128], index: 1, kind: input, shape index: {}]   ;;  %s267_s2 = inlined_call_operand.hbm [shape: f32[8,128], index: 2, kind: output, shape index: {}]  }
   0x1   :  { %8 = vsyncpa [#allocation6], 0 }
   0x2   :  { %9 = vsyncpa [#allocation4], 0  ;;  %s209_s9 = smov [#allocation2]   ;;  %s137_s13 = scalar_lea.hbm %s265_s0, 256 }
   0x3   :  { %s19_s10 = sshll.u32 %s209_s9, 4  ;;  %p138_p0 = scmp.ne.s32.totalorder %s265_s0, %s137_s13  ;;  %s20_s10 = int_to_ptr.vmem [resolvable:$true] %s19_s10 }
   0x4   :  { %p141_p1 = scmp.lt.u32.totalorder %s137_s13, %s265_s0 }
   0x6   :  { %p143_p2 = pnand %p141_p1, %p138_p0 }
   0x8   :  { %146 = shalt.err (!%p143_p2)
}
   0x9   :  { %s147_s18 = scalar_lea.vmem %s20_s10, 256  ;;  %p152_p4 = scmp.lt.s32.totalorder %s20_s10, %s20_s10 }
   0xa   :  { %p148_p3 = scmp.ne.s32.totalorder %s20_s10, %s147_s18  ;;  %p153_p5 = scmp.lt.s32.totalorder %s147_s18, %s147_s18 }
   0xc   :  { %p154_p6 = por %p153_p5, %p152_p4 }
   0xe   :  { %p155_p7 = pnand %p154_p6, %p148_p3 }
  0x10   :  { %158 = shalt.err (!%p155_p7)
}
  0x11   :  { %s210_s19 = smov 128   ;;  %s211_s20 = smov 8  }
  0x12   :  { %25 = dma.hbm_to_vmem [thread:$0]  %s265_s0, 256, %s20_s10, [#allocation3], %s210_s19, %s210_s19, %s211_s20  }
  0x13   :  { %s212_s23 = smov [#allocation5]   ;;  %s159_s27 = scalar_lea.hbm %s266_s1, 256 }
  0x14   :  { %s35_s24 = sshll.u32 %s212_s23, 4  ;;  %p160_p8 = scmp.ne.s32.totalorder %s266_s1, %s159_s27  ;;  %s36_s24 = int_to_ptr.vmem [resolvable:$true] %s35_s24 }
  0x15   :  { %p163_p9 = scmp.lt.u32.totalorder %s159_s27, %s266_s1 }
  0x17   :  { %p165_p10 = pnand %p163_p9, %p160_p8 }
  0x19   :  { %168 = shalt.err (!%p165_p10)
}
  0x1a   :  { %s169_s4 = scalar_lea.vmem %s36_s24, 256  ;;  %p174_p12 = scmp.lt.s32.totalorder %s36_s24, %s36_s24 }
  0x1b   :  { %p170_p11 = scmp.ne.s32.totalorder %s36_s24, %s169_s4  ;;  %p175_p13 = scmp.lt.s32.totalorder %s169_s4, %s169_s4 }
  0x1d   :  { %p176_p0 = por %p175_p13, %p174_p12 }
  0x1f   :  { %p177_p1 = pnand %p176_p0, %p170_p11 }
  0x21   :  { %180 = shalt.err (!%p177_p1)
}
  0x22   :  { %41 = dma.hbm_to_vmem [thread:$0]  %s266_s1, 256, %s36_s24, [#allocation6], %s210_s19, %s210_s19, %s211_s20  }
  0x23   :  { %203 = dma.done.wait [#allocation3], 256  }
  0x24   :  { %204 = vsyncadd [#allocation3], 4294967040 }
  0x25   :  { %205 = dma.done.wait [#allocation6], 256  }
  0x26   :  { %206 = vsyncadd [#allocation6], 4294967040  ;;  %v57_v0 = vld [vmem:[#allocation2] sm:$0xff]  ;;  %v58_v1 = vld [vmem:[#allocation2 + $0x8] sm:$0xff]  ;;  %s213_s1 = smov [#allocation7]  }
  0x27   :  { %v63_v2 = vand.u32 2147483647, %v57_v0  ;;  %v64_v3 = vand.u32 2147483647, %v58_v1  ;;  %v59_v14 = vld [vmem:[#allocation5] sm:$0xff]  ;;  %v60_v16 = vld [vmem:[#allocation5 + $0x8] sm:$0xff] }
  0x28   :  { %v91_v20 = vmul.f32 0.98, %v59_v14  ;;  %v92_v22 = vmul.f32 0.98, %v60_v16  ;;  %v61_v24 = vmax.f32 %v57_v0, 0.0  ;;  %v97_v26 = vmul.f32 %v59_v14, %v57_v0  ;;  %s113_s6 = sshll.u32 %s213_s1, 4  ;;  %s114_s6 = int_to_ptr.vmem [resolvable:$true] %s113_s6 }
  0x29   :  { %v65_v4 = vsub.f32 0.0, %v63_v2  ;;  %v66_v5 = vsub.f32 0.0, %v64_v3  ;;  %v62_v28 = vmax.f32 %v58_v1, 0.0  ;;  %v98_v30 = vmul.f32 %v60_v16, %v58_v1  ;;  %s181_s7 = scalar_lea.vmem %s114_s6, 128  ;;  %p186_p3 = scmp.lt.s32.totalorder %s114_s6, %s114_s6 }
  0x2a   :  { %v93_v32 = vadd.f32 0.01, %v91_v20  ;;  %v94_v34 = vadd.f32 0.01, %v92_v22  ;;  %v99_v37 = vmul.f32 0.99, %v97_v26  ;;  %p182_p2 = scmp.ne.s32.totalorder %s114_s6, %s181_s7  ;;  %p187_p4 = scmp.lt.s32.totalorder %s181_s7, %s181_s7 }
  0x2b   :  { %v67_v6 = vmul.f32 1.442695, %v65_v4  ;;  %v69_v7 = vmul.f32 1.442695, %v66_v5  ;;  %v100_v39 = vmul.f32 0.99, %v98_v30 }
  0x2c   :  { %p188_p5 = por %p187_p4, %p186_p3 }
  0x2d   :  { %129 = vpow2.f32 %v67_v6 }
  0x2e   :  { %131 = vpow2.f32 %v69_v7  ;;  %p189_p6 = pnand %p188_p5, %p182_p2 }
  0x37   :  { %v130_v8 = vpop.eup %129 }
  0x38   :  { %v132_v9 = vpop.eup %131  ;;  %v71_v10 = vadd.f32 1.0, %v130_v8  ;;  %v74_v12 = vmul.f32 -0.5, %v130_v8  ;;  %v77_v17 = vand.u32 2147483647, %v130_v8 }
  0x39   :  { %v80_v11 = vadd.f32 1.0, %v132_v9  ;;  %v83_v13 = vmul.f32 -0.5, %v132_v9  ;;  %v86_v19 = vand.u32 2147483647, %v132_v9 }
  0x3a   :  { %133 = vlog2.f32 %v71_v10  ;;  %v75_v15 = vadd.f32 1.0, %v74_v12  ;;  %vm78_vm0 = vcmp.lt.f32.partialorder %v77_v17, 0.0004427343 }
  0x3b   :  { %135 = vlog2.f32 %v80_v11  ;;  %v84_v18 = vadd.f32 1.0, %v83_v13  ;;  %vm87_vm1 = vcmp.lt.f32.partialorder %v86_v19, 0.0004427343 }
  0x3c   :  { %v76_v21 = vmul.f32 %v130_v8, %v75_v15 }
  0x3d   :  { %v85_v25 = vmul.f32 %v132_v9, %v84_v18 }
  0x44   :  { %v134_v23 = vpop.eup %133 }
  0x45   :  { %v136_v27 = vpop.eup %135  ;;  %v73_v29 = vmul.f32 0.6931472, %v134_v23 }
  0x46   :  { %v82_v31 = vmul.f32 0.6931472, %v136_v27 }
  0x47   :  { %v79_v33 = vsel %vm78_vm0, %v76_v21, %v73_v29 }
  0x48   :  { %v88_v35 = vsel %vm87_vm1, %v85_v25, %v82_v31  ;;  %v89_v36 = vadd.f32 %v79_v33, %v61_v24 }
  0x49   :  { %v90_v38 = vadd.f32 %v88_v35, %v62_v28 }
  0x4a   :  { %v95_v40 = vmul.f32 %v93_v32, %v89_v36 }
  0x4b   :  { %v96_v41 = vmul.f32 %v94_v34, %v90_v38 }
  0x4c   :  { %v101_v42 = vsub.f32 %v95_v40, %v99_v37 }
  0x4d   :  { %v102_v43 = vsub.f32 %v96_v41, %v100_v39 }
  0x4f   :  { %v104_v44 = vadd.f32 %v102_v43, %v101_v42 }
  0x51   :  { %106 = vst [vmem:[#allocation7] sm:$0xff] %v104_v44 }
  0x52   :  { %192 = shalt.err (!%p189_p6)
}
  0x53   :  { %s193_s10 = scalar_lea.hbm %s267_s2, 128 }
  0x54   :  { %p194_p7 = scmp.ne.s32.totalorder %s267_s2, %s193_s10  ;;  %p197_p8 = scmp.lt.u32.totalorder %s193_s10, %s267_s2 }
  0x56   :  { %p199_p9 = pnand %p197_p8, %p194_p7 }
  0x58   :  { %202 = shalt.err (!%p199_p9)
}
  0x59   :  { %116 = dma.vmem_to_hbm [thread:$0]  %s114_s6, 128, %s267_s2, [#allocation4]  }
  0x5a   :  { %207 = dma.done.wait [#allocation4], 128  }
  0x5b   :  { %208 = vsyncadd [#allocation4], 4294967168 }
  0x5c   :  { %120 = vsyncpa [#allocation3], 1 }
  0x5d   :  { %121 = vsyncpa [#allocation6], 1 }
  0x5e   :  { %122 = vsyncpa [#allocation4], 1 }

</bundles_post_ra>
